<compile_context>
chip_gen: v7x
topology: tpu7x:2x2x1
jax: 0.10.0
libtpu: 0.0.40
codegen_flags: <defaults>
</compile_context>

<pallas_src>
import jax
import jax.numpy as jnp
from jax import lax
from jax.experimental import pallas as pl
from jax.experimental.pallas import tpu as pltpu


def _attention_kernel(q_ref, k_ref, v_ref, w1_ref, w2_ref, w0_ref, bias_ref, o_ref):
    Bb, S, H = q_ref.shape
    L = w0_ref.shape[0]

    # Leading-dim (sublane-only) merge for the shared-weight matmuls — near free.
    q = q_ref[...].reshape(Bb * S, H)
    k = k_ref[...].reshape(Bb * S, H)

    # pre = relu(k @ W1 + q @ W2 + bias) — two MXU pushes, f32 accumulation.
    pre = (jnp.dot(k, w1_ref[...], preferred_element_type=jnp.float32)
           + jnp.dot(q, w2_ref[...], preferred_element_type=jnp.float32)
           + bias_ref[...])
    pre = jnp.maximum(pre, 0.0)                                   # (Bb*S, H)

    # alpha = pre @ W0.T — contract over H; W0 stays in its natural (L, H) layout.
    alpha = lax.dot_general(pre, w0_ref[...], (((1,), (1,)), ((), ())),
                            preferred_element_type=jnp.float32)   # (Bb*S, L)
    alpha = alpha.reshape(Bb, S, L)

    # TODO(synk): optional `mask` / `dropout` args of the reference forward are not
    # implemented (mask=None, dropout=None path only).

    # softmax over dim=-2 (the sequence axis)
    m = jnp.max(alpha, axis=1, keepdims=True)
    e = jnp.exp(alpha - m)
    s = jnp.sum(e, axis=1, keepdims=True)
    alpha = e * pl.reciprocal(s, approx=True)                     # EUP slot, ~2^-12 rel err

    # out = alpha.transpose(-1, -2) @ v — batched contraction over S, no transpose.
    out = lax.dot_general(alpha, v_ref[...], (((1,), (1,)), ((0,), (0,))),
                          preferred_element_type=jnp.float32)     # (Bb, L, H)

    o_ref[...] = out.astype(o_ref.dtype)


def attention_forward(q, k, v, w0, w1, w2, bias, *, batch_block=None):
    """q, k, v: (B, S, H). w0: (L, H). w1, w2: (H, H). bias: (H,). Returns (B, L, H)."""
    B, S, H = q.shape
    L = w0.shape[0]

    if batch_block is None:
        # Cap the per-step row count (B_blk * S) so the resident f32 working set
        # stays far below v7x's scoped-VMEM default while still amortizing the
        # per-grid-step overhead for large batches.
        batch_block = min(B, max(1, 2048 // S))

    grid = (pl.cdiv(B, batch_block),)
    bias2d = bias.reshape(1, H)  # 2-D for VMEM-friendly layout (pure view of a param)

    # Weights / bias use constant index_maps -> fetched once, VMEM-resident across steps.
    out = pl.pallas_call(
        _attention_kernel,
        out_shape=jax.ShapeDtypeStruct((B, L, H), q.dtype),
        grid=grid,
        in_specs=[
            pl.BlockSpec((batch_block, S, H), lambda i: (i, 0, 0)),  # q
            pl.BlockSpec((batch_block, S, H), lambda i: (i, 0, 0)),  # k
            pl.BlockSpec((batch_block, S, H), lambda i: (i, 0, 0)),  # v
            pl.BlockSpec((H, H), lambda i: (0, 0)),                  # w1
            pl.BlockSpec((H, H), lambda i: (0, 0)),                  # w2
            pl.BlockSpec((L, H), lambda i: (0, 0)),                  # w0
            pl.BlockSpec((1, H), lambda i: (0, 0)),                  # bias
        ],
        out_specs=pl.BlockSpec((batch_block, L, H), lambda i: (i, 0, 0)),
        compiler_params=pltpu.CompilerParams(
            dimension_semantics=("parallel",),   # v7x: shard batch chunks across both TCs
        ),
    )(q, k, v, w1, w2, w0, bias2d)

    return out


def reference_forward(q, k, v, w0, w1, w2, bias):
    pre = jax.nn.relu(k @ w1 + q @ w2 + bias)
    alpha = pre @ w0.T
    alpha = jax.nn.softmax(alpha, axis=-2)
    return jnp.swapaxes(alpha, -1, -2) @ v


if __name__ == "__main__":
    # module hyperparams
    hidden_dim = 32
    session_len = 8
    batch = 2
    seq = session_len  # q/k/v sequence length

    key = jax.random.PRNGKey(0)
    kq_, kk_, kv_, k0, k1, k2 = jax.random.split(key, 6)

    # deterministic "init.normal_(.., 0, 0.05)" parameters
    attn_w0 = 0.05 * jax.random.normal(k0, (session_len, hidden_dim), jnp.float32)
    attn_w1 = 0.05 * jax.random.normal(k1, (hidden_dim, hidden_dim), jnp.float32)
    attn_w2 = 0.05 * jax.random.normal(k2, (hidden_dim, hidden_dim), jnp.float32)
    attn_bias = jnp.zeros((hidden_dim,), jnp.float32)

    q = jax.random.normal(kq_, (batch, seq, hidden_dim), jnp.float32)
    k = jax.random.normal(kk_, (batch, seq, hidden_dim), jnp.float32)
    v = jax.random.normal(kv_, (batch, seq, hidden_dim), jnp.float32)

    out = attention_forward(q, k, v, attn_w0, attn_w1, attn_w2, attn_bias)
    out = jax.block_until_ready(out)

    ref = reference_forward(q, k, v, attn_w0, attn_w1, attn_w2, attn_bias)
    assert out.shape == (batch, session_len, hidden_dim)
    # tolerance accounts for the EUP approximate reciprocal in the softmax denominator
    assert jnp.allclose(out, ref, atol=1e-3, rtol=1e-3), "mismatch vs reference"

    print("KERNEL_OK")
</pallas_src>

<mosaic_0001>
module attributes {stable_mosaic.version = 11 : i64} {
  func.func @_attention_kernel(%arg0: i32, %arg1: memref<2x8x32xf32, #tpu.memory_space<vmem>>, %arg2: memref<2x8x32xf32, #tpu.memory_space<vmem>>, %arg3: memref<2x8x32xf32, #tpu.memory_space<vmem>>, %arg4: memref<32x32xf32, #tpu.memory_space<vmem>>, %arg5: memref<32x32xf32, #tpu.memory_space<vmem>>, %arg6: memref<8x32xf32, #tpu.memory_space<vmem>>, %arg7: memref<1x32xf32, #tpu.memory_space<vmem>>, %arg8: memref<2x8x32xf32, #tpu.memory_space<vmem>>) attributes {dimension_semantics = [#tpu.dimension_semantics<parallel>], iteration_bounds = array<i64: 1>, scalar_prefetch = 0 : i64, scratch_operands = 0 : i64, tpu.core_type = #tpu.core_type<tc>, window_params = [{transform_indices = @transform_0, window_bounds = array<i64: 2, 8, 32>}, {transform_indices = @transform_1, window_bounds = array<i64: 2, 8, 32>}, {transform_indices = @transform_2, window_bounds = array<i64: 2, 8, 32>}, {pipeline_mode = #tpu.pipeline_mode<synchronous>, transform_indices = @transform_3, window_bounds = array<i64: 32, 32>}, {pipeline_mode = #tpu.pipeline_mode<synchronous>, transform_indices = @transform_4, window_bounds = array<i64: 32, 32>}, {pipeline_mode = #tpu.pipeline_mode<synchronous>, transform_indices = @transform_5, window_bounds = array<i64: 8, 32>}, {pipeline_mode = #tpu.pipeline_mode<synchronous>, transform_indices = @transform_6, window_bounds = array<i64: 1, 32>}, {transform_indices = @transform_7, window_bounds = array<i64: 2, 8, 32>}]} {
    %c0 = arith.constant 0 : index
    %c0_0 = arith.constant 0 : index
    %c0_1 = arith.constant 0 : index
    %0 = vector.load %arg1[%c0, %c0_0, %c0_1] : memref<2x8x32xf32, #tpu.memory_space<vmem>>, vector<2x8x32xf32>
    %1 = vector.shape_cast %0 : vector<2x8x32xf32> to vector<16x32xf32>
    %c0_2 = arith.constant 0 : index
    %c0_3 = arith.constant 0 : index
    %c0_4 = arith.constant 0 : index
    %2 = vector.load %arg2[%c0_2, %c0_3, %c0_4] : memref<2x8x32xf32, #tpu.memory_space<vmem>>, vector<2x8x32xf32>
    %3 = vector.shape_cast %2 : vector<2x8x32xf32> to vector<16x32xf32>
    %c0_5 = arith.constant 0 : index
    %c0_6 = arith.constant 0 : index
    %4 = vector.load %arg4[%c0_5, %c0_6] : memref<32x32xf32, #tpu.memory_space<vmem>>, vector<32x32xf32>
    %cst = arith.constant dense<0.000000e+00> : vector<16x32xf32>
    %5 = tpu.matmul %3, %4, %cst {dimension_numbers = #tpu.dot_dimension_numbers<[1], [0], [0], [1], [0, 0, 1, 1], [], []>} : vector<16x32xf32>, vector<32x32xf32>, vector<16x32xf32> -> vector<16x32xf32>
    %c0_7 = arith.constant 0 : index
    %c0_8 = arith.constant 0 : index
    %6 = vector.load %arg5[%c0_7, %c0_8] : memref<32x32xf32, #tpu.memory_space<vmem>>, vector<32x32xf32>
    %cst_9 = arith.constant dense<0.000000e+00> : vector<16x32xf32>
    %7 = tpu.matmul %1, %6, %cst_9 {dimension_numbers = #tpu.dot_dimension_numbers<[1], [0], [0], [1], [0, 0, 1, 1], [], []>} : vector<16x32xf32>, vector<32x32xf32>, vector<16x32xf32> -> vector<16x32xf32>
    %8 = arith.addf %5, %7 : vector<16x32xf32>
    %c0_10 = arith.constant 0 : index
    %c0_11 = arith.constant 0 : index
    %9 = vector.load %arg7[%c0_10, %c0_11] : memref<1x32xf32, #tpu.memory_space<vmem>>, vector<1x32xf32>
    %10 = vector.broadcast %9 : vector<1x32xf32> to vector<16x32xf32>
    %11 = arith.addf %8, %10 : vector<16x32xf32>
    %cst_12 = arith.constant 0.000000e+00 : f32
    %12 = vector.broadcast %cst_12 : f32 to vector<16x32xf32>
    %13 = arith.maximumf %11, %12 : vector<16x32xf32>
    %c0_13 = arith.constant 0 : index
    %c0_14 = arith.constant 0 : index
    %14 = vector.load %arg6[%c0_13, %c0_14] : memref<8x32xf32, #tpu.memory_space<vmem>>, vector<8x32xf32>
    %cst_15 = arith.constant dense<0.000000e+00> : vector<16x8xf32>
    %15 = tpu.matmul %13, %14, %cst_15 {dimension_numbers = #tpu.dot_dimension_numbers<[1], [1], [0], [0], [0, 0, 1, 0], [], []>} : vector<16x32xf32>, vector<8x32xf32>, vector<16x8xf32> -> vector<16x8xf32>
    %16 = vector.shape_cast %15 : vector<16x8xf32> to vector<2x8x8xf32>
    %cst_16 = arith.constant dense<0xFF800000> : vector<2x8xf32>
    %17 = vector.multi_reduction <maximumf>, %16, %cst_16 [1] : vector<2x8x8xf32> to vector<2x8xf32>
    %18 = vector.shape_cast %17 : vector<2x8xf32> to vector<2x1x8xf32>
    %19 = vector.broadcast %18 : vector<2x1x8xf32> to vector<2x8x8xf32>
    %20 = arith.subf %16, %19 : vector<2x8x8xf32>
    %21 = math.exp %20 : vector<2x8x8xf32>
    %cst_17 = arith.constant dense<0.000000e+00> : vector<2x8xf32>
    %22 = vector.multi_reduction <add>, %21, %cst_17 [1] : vector<2x8x8xf32> to vector<2x8xf32>
    %23 = vector.shape_cast %22 : vector<2x8xf32> to vector<2x1x8xf32>
    %24 = tpu.reciprocal %23 {approx = true} : vector<2x1x8xf32> -> vector<2x1x8xf32>
    %25 = vector.broadcast %24 : vector<2x1x8xf32> to vector<2x8x8xf32>
    %26 = arith.mulf %21, %25 : vector<2x8x8xf32>
    %c0_18 = arith.constant 0 : index
    %c0_19 = arith.constant 0 : index
    %c0_20 = arith.constant 0 : index
    %27 = vector.load %arg3[%c0_18, %c0_19, %c0_20] : memref<2x8x32xf32, #tpu.memory_space<vmem>>, vector<2x8x32xf32>
    %cst_21 = arith.constant dense<0.000000e+00> : vector<2x8x32xf32>
    %28 = tpu.matmul %26, %27, %cst_21 {dimension_numbers = #tpu.dot_dimension_numbers<[1], [1], [2], [2], [0, 0, 0, 2, 1, 2], [0], [0]>} : vector<2x8x8xf32>, vector<2x8x32xf32>, vector<2x8x32xf32> -> vector<2x8x32xf32>
    %c0_22 = arith.constant 0 : index
    %c0_23 = arith.constant 0 : index
    %c0_24 = arith.constant 0 : index
    %29 = vector.load %arg8[%c0_22, %c0_23, %c0_24] : memref<2x8x32xf32, #tpu.memory_space<vmem>>, vector<2x8x32xf32>
    tpu.vector_store %arg8[%c0_22, %c0_23, %c0_24], %28 {strides = array<i32>} : memref<2x8x32xf32, #tpu.memory_space<vmem>>, vector<2x8x32xf32>,
    return
  }
  func.func @transform_0(%arg0: i32) -> (i32, i32, i32) {
    %c0_i32 = arith.constant 0 : i32
    %c0_i32_0 = arith.constant 0 : i32
    %c0_i32_1 = arith.constant 0 : i32
    return %arg0, %c0_i32, %c0_i32_0 : i32, i32, i32
  }
  func.func @transform_1(%arg0: i32) -> (i32, i32, i32) {
    %c0_i32 = arith.constant 0 : i32
    %c0_i32_0 = arith.constant 0 : i32
    %c0_i32_1 = arith.constant 0 : i32
    return %arg0, %c0_i32, %c0_i32_0 : i32, i32, i32
  }
  func.func @transform_2(%arg0: i32) -> (i32, i32, i32) {
    %c0_i32 = arith.constant 0 : i32
    %c0_i32_0 = arith.constant 0 : i32
    %c0_i32_1 = arith.constant 0 : i32
    return %arg0, %c0_i32, %c0_i32_0 : i32, i32, i32
  }
  func.func @transform_3(%arg0: i32) -> (i32, i32) {
    %c0_i32 = arith.constant 0 : i32
    %c0_i32_0 = arith.constant 0 : i32
    %c0_i32_1 = arith.constant 0 : i32
    return %c0_i32, %c0_i32_0 : i32, i32
  }
  func.func @transform_4(%arg0: i32) -> (i32, i32) {
    %c0_i32 = arith.constant 0 : i32
    %c0_i32_0 = arith.constant 0 : i32
    %c0_i32_1 = arith.constant 0 : i32
    return %c0_i32, %c0_i32_0 : i32, i32
  }
  func.func @transform_5(%arg0: i32) -> (i32, i32) {
    %c0_i32 = arith.constant 0 : i32
    %c0_i32_0 = arith.constant 0 : i32
    %c0_i32_1 = arith.constant 0 : i32
    return %c0_i32, %c0_i32_0 : i32, i32
  }
  func.func @transform_6(%arg0: i32) -> (i32, i32) {
    %c0_i32 = arith.constant 0 : i32
    %c0_i32_0 = arith.constant 0 : i32
    %c0_i32_1 = arith.constant 0 : i32
    return %c0_i32, %c0_i32_0 : i32, i32
  }
  func.func @transform_7(%arg0: i32) -> (i32, i32, i32) {
    %c0_i32 = arith.constant 0 : i32
    %c0_i32_0 = arith.constant 0 : i32
    %c0_i32_1 = arith.constant 0 : i32
    return %arg0, %c0_i32, %c0_i32_0 : i32, i32, i32
  }
}

</mosaic_0001>

<bundles_post_ra>
// kernel: tpu_custom_call.1
= control target key start
LH: loop header
LB: loop body
LE: loop exit
PB: predicated region body
PF: predicated region fallthrough
CT: control target
= control target key end

     0   :  { %12 = vsyncpa [#allocation3], 0  ;;  %s1058_s0 = inlined_call_operand.hbm [shape: f32[2,8,32], index: 0, kind: input, shape index: {}]   ;;  %s1059_s1 = inlined_call_operand.hbm [shape: f32[2,8,32], index: 1, kind: input, shape index: {}]   ;;  %s1060_s2 = inlined_call_operand.hbm [shape: f32[2,8,32], index: 2, kind: input, shape index: {}]   ;;  %s1061_s3 = inlined_call_operand.hbm [shape: f32[32,32], index: 3, kind: input, shape index: {}]   ;;  %s1062_s4 = inlined_call_operand.hbm [shape: f32[32,32], index: 4, kind: input, shape index: {}]   ;;  %s1063_s5 = inlined_call_operand.vmem [shape: f32[8,32], index: 5, kind: input, shape index: {}]   ;;  %s1064_s6 = inlined_call_operand.vmem [shape: f32[1,32], index: 6, kind: input, shape index: {}]   ;;  %s1065_s7 = inlined_call_operand.hbm [shape: f32[2,8,32], index: 7, kind: output, shape index: {}]  }
   0x1   :  { %13 = vsyncpa [#allocation6], 0 }
   0x2   :  { %14 = vsyncpa [#allocation9], 0 }
   0x3   :  { %15 = vsyncpa [#allocation4], 0  ;;  %s880_s24 = smov [#allocation5]   ;;  %s881_s26 = smov [#allocation8]  }
   0x4   :  { %s33_s25 = sshll.u32 %s880_s24, 4  ;;  %s57_s27 = sshll.u32 %s881_s26, 4  ;;  %s34_s25 = int_to_ptr.vmem [resolvable:$true] %s33_s25  ;;  %s930_s27 = int_to_ptr.vmem [resolvable:$true] %s57_s27 }
   0x5   :  { %s740_s30 = scalar_lea.hbm %s1059_s1, 256 }
   0x6   :  { %p741_p0 = scmp.ne.s32.totalorder %s1059_s1, %s740_s30  ;;  %p744_p1 = scmp.lt.u32.totalorder %s740_s30, %s1059_s1 }
   0x8   :  { %p746_p2 = pnand %p744_p1, %p741_p0 }
   0xa   :  { %749 = shalt.err (!%p746_p2)
}
   0xb   :  { %s750_s12 = scalar_lea.vmem %s34_s25, 256  ;;  %p755_p4 = scmp.lt.s32.totalorder %s34_s25, %s34_s25 }
   0xc   :  { %p751_p3 = scmp.ne.s32.totalorder %s34_s25, %s750_s12  ;;  %p756_p5 = scmp.lt.s32.totalorder %s750_s12, %s750_s12 }
   0xe   :  { %p757_p6 = por %p756_p5, %p755_p4 }
  0x10   :  { %p758_p7 = pnand %p757_p6, %p751_p3 }
  0x12   :  { %761 = shalt.err (!%p758_p7)
}
  0x13   :  { %s882_s13 = smov 128   ;;  %s883_s14 = smov 8  }
  0x14   :  { %39 = dma.hbm_to_vmem [thread:$0]  %s1059_s1, 256, %s34_s25, [#allocation6], %s882_s13, %s882_s13, %s883_s14  }
  0x15   :  { %s762_s19 = scalar_lea.hbm %s1061_s3, 512 }
  0x16   :  { %p763_p8 = scmp.ne.s32.totalorder %s1061_s3, %s762_s19  ;;  %p766_p9 = scmp.lt.u32.totalorder %s762_s19, %s1061_s3 }
  0x18   :  { %p768_p10 = pnand %p766_p9, %p763_p8 }
  0x1a   :  { %771 = shalt.err (!%p768_p10)
}
  0x1b   :  { %s772_s24 = scalar_lea.vmem %s930_s27, 512  ;;  %p777_p12 = scmp.lt.s32.totalorder %s930_s27, %s930_s27 }
  0x1c   :  { %p773_p11 = scmp.ne.s32.totalorder %s930_s27, %s772_s24  ;;  %p778_p13 = scmp.lt.s32.totalorder %s772_s24, %s772_s24 }
  0x1e   :  { %p779_p0 = por %p778_p13, %p777_p12 }
  0x20   :  { %p780_p1 = pnand %p779_p0, %p773_p11 }
  0x22   :  { %783 = shalt.err (!%p780_p1)
}
  0x23   :  { %63 = dma.hbm_to_vmem [thread:$0]  %s1061_s3, 512, %s930_s27, [#allocation9], %s882_s13, %s882_s13, %s883_s14  }
  0x24   :  { %s884_s26 = smov [#allocation2]   ;;  %s885_s29 = smov [#allocation7]  }
  0x25   :  { %s21_s28 = sshll.u32 %s884_s26, 4  ;;  %s45_s30 = sshll.u32 %s885_s29, 4  ;;  %s22_s28 = int_to_ptr.vmem [resolvable:$true] %s21_s28  ;;  %s967_s30 = int_to_ptr.vmem [resolvable:$true] %s45_s30 }
  0x26   :  { %s784_s10 = scalar_lea.hbm %s1058_s0, 256 }
  0x27   :  { %p785_p2 = scmp.ne.s32.totalorder %s1058_s0, %s784_s10  ;;  %p788_p3 = scmp.lt.u32.totalorder %s784_s10, %s1058_s0 }
  0x29   :  { %p790_p4 = pnand %p788_p3, %p785_p2 }
  0x2b   :  { %793 = shalt.err (!%p790_p4)
}
  0x2c   :  { %s794_s3 = scalar_lea.vmem %s22_s28, 256  ;;  %p799_p6 = scmp.lt.s32.totalorder %s22_s28, %s22_s28 }
  0x2d   :  { %p795_p5 = scmp.ne.s32.totalorder %s22_s28, %s794_s3  ;;  %p800_p7 = scmp.lt.s32.totalorder %s794_s3, %s794_s3 }
  0x2f   :  { %p801_p8 = por %p800_p7, %p799_p6 }
  0x31   :  { %p802_p9 = pnand %p801_p8, %p795_p5 }
  0x33   :  { %805 = shalt.err (!%p802_p9)
}
  0x34   :  { %27 = dma.hbm_to_vmem [thread:$0]  %s1058_s0, 256, %s22_s28, [#allocation3], %s882_s13, %s882_s13, %s883_s14  }
  0x35   :  { %s806_s20 = scalar_lea.hbm %s1060_s2, 256 }
  0x36   :  { %p807_p10 = scmp.ne.s32.totalorder %s1060_s2, %s806_s20  ;;  %p810_p11 = scmp.lt.u32.totalorder %s806_s20, %s1060_s2 }
  0x38   :  { %p812_p12 = pnand %p810_p11, %p807_p10 }
  0x3a   :  { %815 = shalt.err (!%p812_p12)
}
  0x3b   :  { %s816_s1 = scalar_lea.vmem %s967_s30, 256  ;;  %p821_p0 = scmp.lt.s32.totalorder %s967_s30, %s967_s30 }
  0x3c   :  { %p817_p13 = scmp.ne.s32.totalorder %s967_s30, %s816_s1  ;;  %p822_p1 = scmp.lt.s32.totalorder %s816_s1, %s816_s1 }
  0x3e   :  { %p823_p2 = por %p822_p1, %p821_p0 }
  0x40   :  { %p824_p3 = pnand %p823_p2, %p817_p13 }
  0x42   :  { %827 = shalt.err (!%p824_p3)
}
  0x43   :  { %51 = dma.hbm_to_vmem [thread:$0]  %s1060_s2, 256, %s967_s30, [#allocation6], %s882_s13, %s882_s13, %s883_s14  }
  0x44   :  { %s886_s26 = smov [#allocation10]   ;;  %s828_s9 = scalar_lea.hbm %s1062_s4, 512 }
  0x45   :  { %s69_s28 = sshll.u32 %s886_s26, 4  ;;  %p829_p4 = scmp.ne.s32.totalorder %s1062_s4, %s828_s9  ;;  %s70_s28 = int_to_ptr.vmem [resolvable:$true] %s69_s28 }
  0x46   :  { %p832_p5 = scmp.lt.u32.totalorder %s828_s9, %s1062_s4 }
  0x48   :  { %p834_p6 = pnand %p832_p5, %p829_p4 }
  0x4a   :  { %837 = shalt.err (!%p834_p6)
}
  0x4b   :  { %s838_s16 = scalar_lea.vmem %s70_s28, 512  ;;  %p843_p8 = scmp.lt.s32.totalorder %s70_s28, %s70_s28 }
  0x4c   :  { %p839_p7 = scmp.ne.s32.totalorder %s70_s28, %s838_s16  ;;  %p844_p9 = scmp.lt.s32.totalorder %s838_s16, %s838_s16 }
  0x4e   :  { %p845_p10 = por %p844_p9, %p843_p8 }
  0x50   :  { %p846_p11 = pnand %p845_p10, %p839_p7 }
  0x52   :  { %849 = shalt.err (!%p846_p11)
}
  0x53   :  { %75 = dma.hbm_to_vmem [thread:$0]  %s1062_s4, 512, %s70_s28, [#allocation9], %s882_s13, %s882_s13, %s883_s14  }
  0x54   :  { %872 = dma.done.wait [#allocation3], 256  }
  0x55   :  { %873 = vsyncadd [#allocation3], 4294967040 }
  0x56   :  { %874 = dma.done.wait [#allocation6], 512  }
  0x57   :  { %875 = vsyncadd [#allocation6], 4294966784 }
  0x58   :  { %876 = dma.done.wait [#allocation9], 1024  }
  0x59   :  { %877 = vsyncadd [#allocation9], 4294966272  ;;  %vm107_vm0 = vcmask 261120   ;;  %v103_v0 = vld [vmem:[#allocation10] sm:$0xff]  ;;  %v104_v1 = vld [vmem:[#allocation10 + $0x8] sm:$0xff]  ;;  %v887_v25 = vmov 0.0  }
  0x5a   :  { %v105_v2 = vld [vmem:[#allocation10 + $0x10] sm:$0xff]  ;;  %v704_v3 = vpack.c.bf16 %v104_v1, %v103_v0  ;;  %v106_v4 = vld [vmem:[#allocation10 + $0x18] sm:$0xff]  ;;  %v99_v7 = vld [vmem:[#allocation8] sm:$0xff]  ;;  %vm888_vm1 = vmmov 0   ;;  %vm366_vm2 = vcmask 64512  }
  0x5b   :  { %v95_v5 = vld [vmem:[#allocation2] sm:$0xff]  ;;  %v708_v6 = vpack.c.bf16 %v106_v4, %v105_v2  ;;  %v100_v8 = vld [vmem:[#allocation8 + $0x8] sm:$0xff]  ;;  %v102_v11 = vld [vmem:[#allocation8 + $0x18] sm:$0xff] }
  0x5c   :  { %675 = vmatprep.mubr.msk.f32.mxu0 %vm107_vm0, %v95_v5  ;;  %705 = vmatprep.subr.bf16.mxu0 %v704_v3  ;;  %v712_v9 = vpack.c.bf16 %v100_v8, %v99_v7  ;;  %v101_v10 = vld [vmem:[#allocation8 + $0x10] sm:$0xff]  ;;  %v96_v12 = vld [vmem:[#allocation2 + $0x8] sm:$0xff]  ;;  %v97_v14 = vld [vmem:[#allocation5] sm:$0xff] }
  0x5d   :  { %707 = vmatpush3.bf16.msra.mxu0 %v704_v3  ;;  %v716_v13 = vpack.c.bf16 %v102_v11, %v101_v10  ;;  %v98_v15 = vld [vmem:[#allocation5 + $0x8] sm:$0xff]  ;;  %v281_v16 = vld [vmem:[%s1063_s5] sm:$0xff]  ;;  %v406_v2 = vld [vmem:[#allocation7 + $0x8] sm:$0xff]  ;;  %s889_s5 = smov [#allocation11]  }
  0x5e   :  { %709 = vmatprep.subr.bf16.mxu0 %v708_v6  ;;  %689 = vmatprep.subr.msk.mxu1 %vm107_vm0, %v281_v16  ;;  %v642_v17 = vld [vmem:[%s1064_s6] ss:$0 sm:$0xff]  ;;  %s624_s6 = sshll.u32 %s889_s5, 4  ;;  %s625_s6 = int_to_ptr.vmem [resolvable:$true] %s624_s6 }
  0x5f   :  { %690 = vmatpush3.xpose.msk.msra.mxu1 %vm107_vm0, %v281_v16  ;;  %v405_v24 = vld [vmem:[#allocation7] sm:$0xff]  ;;  %s850_s18 = scalar_lea.vmem %s625_s6, 256  ;;  %p855_p13 = scmp.lt.s32.totalorder %s625_s6, %s625_s6 }
  0x60   :  { %694 = vmatprep.subr.mxu1 %v887_v25  ;;  %p851_p12 = scmp.ne.s32.totalorder %s625_s6, %s850_s18  ;;  %p856_p0 = scmp.lt.s32.totalorder %s850_s18, %s850_s18 }
  0x61   :  { %711 = vmatpush3.bf16.msra.mxu0 %v708_v6 }
  0x62   :  { %713 = vmatprep.subr.bf16.mxu0 %v712_v9  ;;  %p857_p1 = por %p856_p0, %p855_p13 }
  0x64   :  { %676 = vmatmul.mubr.msk.f32.vlgmr.msra.gmra.mrb[0].mxu0 %vm107_vm0, %v96_v12  ;;  %p858_p2 = pnand %p857_p1, %p851_p12 }
  0x65   :  { %715 = vmatpush3.bf16.msra.mxu0 %v712_v9  ;;  %686 = vmatprep.mubr.msk.f32.mxu0 %vm107_vm0, %v97_v14 }
  0x66   :  { %717 = vmatprep.subr.bf16.mxu0 %v716_v13 }
  0x69   :  { %719 = vmatpush3.bf16.msra.mxu0 %v716_v13 }
  0x6c   :  { %687 = vmatmul.mubr.msk.f32.vlgmr.msra.gmra.mrb[0].mxu0 %vm107_vm0, %v98_v15 }
 0x13f   :  { %v688_v18 = vpop.f32.mrb[0].mxu0 }
 0x140   :  { %v278_v19 = vadd.f32 %v688_v18, %v642_v17  ;;  %v261_v20 = vpop.f32.mrb[1].mxu0 }
 0x141   :  { %v277_v21 = vadd.f32 %v642_v17, %v261_v20 }
 0x142   :  { %v280_v23 = vmax.f32 %v278_v19, 0.0 }
 0x143   :  { %v279_v22 = vmax.f32 %v277_v21, 0.0 }
 0x145   :  { %691 = vmatprep.mubr.msk.f32.mxu1 %vm107_vm0, %v279_v22 }
 0x146   :  { %692 = vmatmul.mubr.msk.f32.vlgmr.msra.gmra.mrb[0].mxu1 %vm107_vm0, %v280_v23 }
 0x147   :  { %696 = vmatprep.mubr.msk.f32.mxu1 %vm888_vm1, %v887_v25  ;;  %695 = vmatpush3.msra.mxu1 %v405_v24 }
 0x148   :  { %699 = vmatprep.subr.mxu1 %v887_v25 }
 0x219   :  { %v693_v26 = vpop.f32.mrb[0].mxu1 }
 0x21a   :  { %v374_v27 = vsel %vm366_vm2, %v693_v26, -inf  ;;  %v357_v28 = vpop.f32.mrb[1].mxu1 }
 0x21b   :  { %v375_v29 = vrot.slane %v374_v27, 4  ;;  %v367_v30 = vsel %vm366_vm2, %v357_v28, -inf }
 0x21c   :  { %v368_v31 = vrot.slane %v367_v30, 4 }
 0x21d   :  { %v376_v32 = vmax.f32 %v374_v27, %v375_v29 }
 0x21e   :  { %v369_v33 = vmax.f32 %v367_v30, %v368_v31 }
 0x21f   :  { %v377_v34 = vrot.slane %v376_v32, 2 }
 0x220   :  { %v370_v35 = vrot.slane %v369_v33, 2 }
 0x221   :  { %v378_v36 = vmax.f32 %v376_v32, %v377_v34 }
 0x222   :  { %v371_v37 = vmax.f32 %v369_v33, %v370_v35 }
 0x223   :  { %v379_v38 = vrot.slane %v378_v36, 1 }
 0x224   :  { %v372_v39 = vrot.slane %v371_v37, 1 }
 0x225   :  { %v380_v40 = vmax.f32 %v378_v36, %v379_v38 }
 0x226   :  { %v373_v41 = vmax.f32 %v371_v37, %v372_v39 }
 0x227   :  { %v382_v42 = vsub.f32 %v693_v26, %v380_v40 }
 0x228   :  { %v381_v43 = vsub.f32 %v357_v28, %v373_v41 }
 0x229   :  { %v385_v44 = vmul.f32 1.442695, %v382_v42 }
 0x22a   :  { %v383_v45 = vmul.f32 1.442695, %v381_v43 }
 0x22b   :  { %732 = vpow2.f32 %v385_v44 }
 0x22c   :  { %734 = vpow2.f32 %v383_v45 }
 0x235   :  { %v733_v46 = vpop.eup %732 }
 0x236   :  { %v735_v47 = vpop.eup %734  ;;  %v394_v48 = vsel %vm366_vm2, %v733_v46, 0.0 }
 0x237   :  { %v395_v49 = vrot.slane %v394_v48, 4  ;;  %v387_v50 = vsel %vm366_vm2, %v735_v47, 0.0 }
 0x238   :  { %v388_v51 = vrot.slane %v387_v50, 4 }
 0x239   :  { %v396_v52 = vadd.f32 %v395_v49, %v394_v48 }
 0x23a   :  { %v389_v53 = vadd.f32 %v388_v51, %v387_v50 }
 0x23b   :  { %v397_v54 = vrot.slane %v396_v52, 2 }
 0x23c   :  { %v390_v55 = vrot.slane %v389_v53, 2 }
 0x23d   :  { %v398_v56 = vadd.f32 %v397_v54, %v396_v52 }
 0x23e   :  { %v391_v57 = vadd.f32 %v390_v55, %v389_v53 }
 0x23f   :  { %v399_v58 = vrot.slane %v398_v56, 1 }
 0x240   :  { %v392_v59 = vrot.slane %v391_v57, 1 }
 0x241   :  { %v400_v61 = vadd.f32 %v399_v58, %v398_v56 }
 0x242   :  { %v393_v60 = vadd.f32 %v392_v59, %v391_v57 }
 0x244   :  { %736 = vrcp.f32 %v393_v60 }
 0x245   :  { %738 = vrcp.f32 %v400_v61 }
 0x24e   :  { %v737_v62 = vpop.eup %736 }
 0x24f   :  { %v403_v63 = vmul.f32 %v737_v62, %v735_v47  ;;  %v739_v0 = vpop.eup %738 }
 0x250   :  { %v404_v1 = vmul.f32 %v739_v0, %v733_v46 }
 0x251   :  { %407 = vxpose.xlu0.b32.start.end [1/1] (short) (narrow) %v403_v63, 8 }
 0x255   :  { %512 = vxpose.xlu0.b32.start.end [1/1] (short) (narrow) %v404_v1, 8 }
 0x2d1   :  { %v423_v3 = vpop.trf.xlu0 }
 0x2d2   :  { %697 = vmatmul.mubr.msk.f32.vlgmr.msra.gmra.mrb[2].mxu1 %vm366_vm2, %v423_v3 }
 0x2d3   :  { %700 = vmatpush3.msra.mxu1 %v406_v2  ;;  %701 = vmatprep.mubr.msk.f32.mxu1 %vm888_vm1, %v887_v25 }
 0x2d5   :  { %v528_v4 = vpop.trf.xlu0 }
 0x2d6   :  { %702 = vmatmul.mubr.msk.f32.vlgmr.msra.gmra.mrb[4].mxu1 %vm366_vm2, %v528_v4 }
 0x3a5   :  { %v508_v5 = vpop.f32.mrb[2].mxu1 }
 0x3a6   :  { %617 = vst.msk [vmem:[#allocation11] sm:$0xff] %vm107_vm0, %v508_v5  ;;  %v698_v6 = vpop.f32.mrb[3].mxu1 }
 0x3a9   :  { %v613_v7 = vpop.f32.mrb[4].mxu1 }
 0x3aa   :  { %618 = vst.msk [vmem:[#allocation11 + $0x8] sm:$0xff] %vm107_vm0, %v613_v7  ;;  %v703_v8 = vpop.f32.mrb[5].mxu1 }
 0x3ab   :  { %861 = shalt.err (!%p858_p2)
}
 0x3ac   :  { %s862_s21 = scalar_lea.hbm %s1065_s7, 256 }
 0x3ad   :  { %p863_p3 = scmp.ne.s32.totalorder %s1065_s7, %s862_s21  ;;  %p866_p4 = scmp.lt.u32.totalorder %s862_s21, %s1065_s7 }
 0x3af   :  { %p868_p5 = pnand %p866_p4, %p863_p3 }
 0x3b1   :  { %871 = shalt.err (!%p868_p5)
}
 0x3b2   :  { %630 = dma.vmem_to_hbm [thread:$0]  %s625_s6, 256, %s1065_s7, [#allocation4], %s882_s13, %s882_s13, %s883_s14  }
 0x3b3   :  { %878 = dma.done.wait [#allocation4], 256  }
 0x3b4   :  { %879 = vsyncadd [#allocation4], 4294967040 }
 0x3b5   :  { %634 = vsyncpa [#allocation3], 1 }
 0x3b6   :  { %635 = vsyncpa [#allocation6], 1 }
 0x3b7   :  { %636 = vsyncpa [#allocation9], 1 }
 0x3b8   :  { %637 = vsyncpa [#allocation4], 1 }

</bundles_post_ra>
